<compile_context>
chip_gen: v6e
topology: v6e:2x2x1
jax: 0.10.0
libtpu: 0.0.40
codegen_flags: <defaults>
</compile_context>

<pallas_src>
import jax
import jax.numpy as jnp
from jax.experimental import pallas as pl
from jax.experimental.pallas import tpu as pltpu

N_INPUTS = 4
N_NODES = 20
N_HIDDEN_LAYERS = 5            # Linear layers followed by ReLU
N_RELU = N_HIDDEN_LAYERS       # layers 0..4 (ReLU); layer 5 is the final 20->1
N_TOTAL = N_HIDDEN_LAYERS + 1

PAD_IN = 32      # padded feature / contraction dim (>= max(4, 20), multiple of 8)
OUT_ROWS = 8     # sublane-padded output rows; row 0 is the real output
TILE_B_MAX = 512 # max batch rows per grid step


def mlp_kernel(x_ref, wh_ref, bh_ref, wl_ref, bl_ref, o_ref):
    # x_ref:  (TILE_B, N_INPUTS)        f32
    # wh_ref: (N_RELU, PAD_IN, PAD_IN)  f32, zero-padded (ReLU layers, stored (in,out))
    # bh_ref: (N_RELU, 1, PAD_IN)       f32, zero-padded
    # wl_ref: (OUT_ROWS, PAD_IN)        f32, final-layer weight, transposed+padded
    # bl_ref: (OUT_ROWS, 1)             f32, final-layer bias in row 0
    # o_ref:  (OUT_ROWS, TILE_B)        f32, row 0 = sigmoid(final layer)
    tile_b = x_ref.shape[0]
    # Zero-extend x to 32 lanes in registers (no VMEM scratch round-trip).
    y = jnp.concatenate(
        [x_ref[...], jnp.zeros((tile_b, PAD_IN - N_INPUTS), jnp.float32)], axis=1)
    for l in range(N_RELU):
        y = jnp.dot(y, wh_ref[l], preferred_element_type=jnp.float32) + bh_ref[l]
        y = jnp.maximum(y, 0.0)          # padded lanes (>=20) stay exactly 0
    # Final layer, transposed: (OUT_ROWS, PAD_IN) x (TILE_B, PAD_IN)^T -> (OUT_ROWS, TILE_B)
    y_t = jax.lax.dot_general(
        wl_ref[...], y,
        dimension_numbers=(((1,), (1,)), ((), ())),
        preferred_element_type=jnp.float32) + bl_ref[...]
    o_ref[...] = jax.nn.sigmoid(y_t)     # lane-dense store; rows 1..7 are junk, dropped outside


def prepare_params(weights, biases):
    """One-time padding/stacking of per-layer params (hoisted out of the forward path)."""
    w_relu, b_relu = [], []
    for l in range(N_RELU):
        w, b = weights[l], biases[l]                     # (in, out), (out,)
        wp = jnp.zeros((PAD_IN, PAD_IN), jnp.float32).at[: w.shape[0], : w.shape[1]].set(w)
        bp = jnp.zeros((1, PAD_IN), jnp.float32).at[0, : b.shape[0]].set(b)
        w_relu.append(wp)
        b_relu.append(bp)
    w_last, b_last = weights[-1], biases[-1]             # (20, 1), (1,)
    wl_t = (jnp.zeros((OUT_ROWS, PAD_IN), jnp.float32)
            .at[: w_last.shape[1], : w_last.shape[0]].set(w_last.T))
    bl = jnp.zeros((OUT_ROWS, 1), jnp.float32).at[: b_last.shape[0], 0].set(b_last)
    return jnp.stack(w_relu), jnp.stack(b_relu), wl_t, bl  # (5,32,32), (5,1,32), (8,32), (8,1)


def _pick_tile(bsz):
    """Batch tile: multiple of 128, <= 512, preferring >= 2 grid steps (v7x megacore)."""
    b128 = pl.cdiv(bsz, 128) * 128
    half = (b128 // 2) // 128 * 128
    return min(TILE_B_MAX, max(128, half))


@jax.jit
def mlp_forward(x, w_relu, b_relu, w_last_t, b_last):
    """x: (bsz, N_INPUTS) f32 -> (bsz, 1) f32."""
    bsz = x.shape[0]
    tile_b = _pick_tile(bsz)
    b_pad = pl.cdiv(bsz, tile_b) * tile_b
    if b_pad != bsz:                                      # static shapes under jit
        x = jnp.pad(x, ((0, b_pad - bsz), (0, 0)))
    out_t = pl.pallas_call(
        mlp_kernel,
        out_shape=jax.ShapeDtypeStruct((OUT_ROWS, b_pad), jnp.float32),
        grid=(b_pad // tile_b,),
        in_specs=[
            pl.BlockSpec((tile_b, N_INPUTS), lambda i: (i, 0)),
            pl.BlockSpec((N_RELU, PAD_IN, PAD_IN), lambda i: (0, 0, 0)),  # VMEM-resident
            pl.BlockSpec((N_RELU, 1, PAD_IN), lambda i: (0, 0, 0)),       # VMEM-resident
            pl.BlockSpec((OUT_ROWS, PAD_IN), lambda i: (0, 0)),           # VMEM-resident
            pl.BlockSpec((OUT_ROWS, 1), lambda i: (0, 0)),                # VMEM-resident
        ],
        out_specs=pl.BlockSpec((OUT_ROWS, tile_b), lambda i: (0, i)),     # lane-dense
        compiler_params=pltpu.CompilerParams(dimension_semantics=("parallel",)),
    )(x, w_relu, b_relu, w_last_t, b_last)
    # Row 0 carries the real output; rows 1..7 and padded batch columns are dropped.
    return out_t[0, :bsz][:, None]


def init_params(key):
    """Deterministic init matching nn.Linear defaults (uniform +-1/sqrt(fan_in))."""
    dims = [N_INPUTS] + [N_NODES] * N_HIDDEN_LAYERS + [1]
    weights, biases = [], []
    for l in range(N_TOTAL):
        fan_in, fan_out = dims[l], dims[l + 1]
        key, kw, kb = jax.random.split(key, 3)
        bound = 1.0 / jnp.sqrt(fan_in)
        # stored as (in, out) so the kernel computes y = x @ W + b
        weights.append(jax.random.uniform(kw, (fan_in, fan_out), jnp.float32, -bound, bound))
        biases.append(jax.random.uniform(kb, (fan_out,), jnp.float32, -bound, bound))
    return weights, biases


def reference_forward(x, weights, biases):
    y = x
    for l in range(N_TOTAL - 1):
        y = jnp.maximum(y @ weights[l] + biases[l], 0.0)
    y = y @ weights[N_TOTAL - 1] + biases[N_TOTAL - 1]
    return jax.nn.sigmoid(y)


if __name__ == "__main__":
    key = jax.random.PRNGKey(0)
    key, kx = jax.random.split(key)
    batch = 256                      # small; 2 batch tiles -> 2-step "parallel" grid
    x = jax.random.normal(kx, (batch, N_INPUTS), jnp.float32)

    weights, biases = init_params(key)
    w_relu, b_relu, w_last_t, b_last = prepare_params(weights, biases)  # one-time

    out = mlp_forward(x, w_relu, b_relu, w_last_t, b_last)
    out = jax.block_until_ready(out)

    ref = reference_forward(x, weights, biases)
    assert out.shape == (batch, 1)
    assert jnp.allclose(out, ref, atol=1e-5, rtol=1e-5), (out, ref)

    print("KERNEL_OK")
</pallas_src>

<mosaic_0001>
module attributes {stable_mosaic.version = 11 : i64} {
  func.func @mlp_kernel(%arg0: i32, %arg1: memref<128x4xf32, #tpu.memory_space<vmem>>, %arg2: memref<5x32x32xf32, #tpu.memory_space<vmem>>, %arg3: memref<5x1x32xf32, #tpu.memory_space<vmem>>, %arg4: memref<8x32xf32, #tpu.memory_space<vmem>>, %arg5: memref<8x1xf32, #tpu.memory_space<vmem>>, %arg6: memref<8x128xf32, #tpu.memory_space<vmem>>) attributes {dimension_semantics = [#tpu.dimension_semantics<parallel>], iteration_bounds = array<i64: 2>, scalar_prefetch = 0 : i64, scratch_operands = 0 : i64, tpu.core_type = #tpu.core_type<tc>, window_params = [{transform_indices = @transform_0, window_bounds = array<i64: 128, 4>}, {pipeline_mode = #tpu.pipeline_mode<synchronous>, transform_indices = @transform_1, window_bounds = array<i64: 5, 32, 32>}, {pipeline_mode = #tpu.pipeline_mode<synchronous>, transform_indices = @transform_2, window_bounds = array<i64: 5, 1, 32>}, {pipeline_mode = #tpu.pipeline_mode<synchronous>, transform_indices = @transform_3, window_bounds = array<i64: 8, 32>}, {pipeline_mode = #tpu.pipeline_mode<synchronous>, transform_indices = @transform_4, window_bounds = array<i64: 8, 1>}, {transform_indices = @transform_5, window_bounds = array<i64: 8, 128>}]} {
    %c0 = arith.constant 0 : index
    %c0_0 = arith.constant 0 : index
    %0 = vector.load %arg1[%c0, %c0_0] : memref<128x4xf32, #tpu.memory_space<vmem>>, vector<128x4xf32>
    %cst = arith.constant 0.000000e+00 : f32
    %1 = vector.broadcast %cst : f32 to vector<128x28xf32>
    %2 = tpu.concatenate %0, %1 in 1 : vector<128x4xf32>, vector<128x28xf32> -> vector<128x32xf32>
    %c0_1 = arith.constant 0 : index
    %c0_2 = arith.constant 0 : index
    %c0_3 = arith.constant 0 : index
    %3 = vector.load %arg2[%c0_1, %c0_2, %c0_3] : memref<5x32x32xf32, #tpu.memory_space<vmem>>, vector<1x32x32xf32>
    %4 = vector.shape_cast %3 : vector<1x32x32xf32> to vector<32x32xf32>
    %cst_4 = arith.constant dense<0.000000e+00> : vector<128x32xf32>
    %5 = tpu.matmul %2, %4, %cst_4 {dimension_numbers = #tpu.dot_dimension_numbers<[1], [0], [0], [1], [0, 0, 1, 1], [], []>} : vector<128x32xf32>, vector<32x32xf32>, vector<128x32xf32> -> vector<128x32xf32>
    %c0_5 = arith.constant 0 : index
    %c0_6 = arith.constant 0 : index
    %c0_7 = arith.constant 0 : index
    %6 = vector.load %arg3[%c0_5, %c0_6, %c0_7] : memref<5x1x32xf32, #tpu.memory_space<vmem>>, vector<1x1x32xf32>
    %7 = vector.shape_cast %6 : vector<1x1x32xf32> to vector<1x32xf32>
    %8 = vector.broadcast %7 : vector<1x32xf32> to vector<128x32xf32>
    %9 = arith.addf %5, %8 : vector<128x32xf32>
    %cst_8 = arith.constant 0.000000e+00 : f32
    %10 = vector.broadcast %cst_8 : f32 to vector<128x32xf32>
    %11 = arith.maximumf %9, %10 : vector<128x32xf32>
    %c1 = arith.constant 1 : index
    %c0_9 = arith.constant 0 : index
    %c0_10 = arith.constant 0 : index
    %12 = vector.load %arg2[%c1, %c0_9, %c0_10] : memref<5x32x32xf32, #tpu.memory_space<vmem>>, vector<1x32x32xf32>
    %13 = vector.shape_cast %12 : vector<1x32x32xf32> to vector<32x32xf32>
    %cst_11 = arith.constant dense<0.000000e+00> : vector<128x32xf32>
    %14 = tpu.matmul %11, %13, %cst_11 {dimension_numbers = #tpu.dot_dimension_numbers<[1], [0], [0], [1], [0, 0, 1, 1], [], []>} : vector<128x32xf32>, vector<32x32xf32>, vector<128x32xf32> -> vector<128x32xf32>
    %c1_12 = arith.constant 1 : index
    %c0_13 = arith.constant 0 : index
    %c0_14 = arith.constant 0 : index
    %15 = vector.load %arg3[%c1_12, %c0_13, %c0_14] : memref<5x1x32xf32, #tpu.memory_space<vmem>>, vector<1x1x32xf32>
    %16 = vector.shape_cast %15 : vector<1x1x32xf32> to vector<1x32xf32>
    %17 = vector.broadcast %16 : vector<1x32xf32> to vector<128x32xf32>
    %18 = arith.addf %14, %17 : vector<128x32xf32>
    %cst_15 = arith.constant 0.000000e+00 : f32
    %19 = vector.broadcast %cst_15 : f32 to vector<128x32xf32>
    %20 = arith.maximumf %18, %19 : vector<128x32xf32>
    %c2 = arith.constant 2 : index
    %c0_16 = arith.constant 0 : index
    %c0_17 = arith.constant 0 : index
    %21 = vector.load %arg2[%c2, %c0_16, %c0_17] : memref<5x32x32xf32, #tpu.memory_space<vmem>>, vector<1x32x32xf32>
    %22 = vector.shape_cast %21 : vector<1x32x32xf32> to vector<32x32xf32>
    %cst_18 = arith.constant dense<0.000000e+00> : vector<128x32xf32>
    %23 = tpu.matmul %20, %22, %cst_18 {dimension_numbers = #tpu.dot_dimension_numbers<[1], [0], [0], [1], [0, 0, 1, 1], [], []>} : vector<128x32xf32>, vector<32x32xf32>, vector<128x32xf32> -> vector<128x32xf32>
    %c2_19 = arith.constant 2 : index
    %c0_20 = arith.constant 0 : index
    %c0_21 = arith.constant 0 : index
    %24 = vector.load %arg3[%c2_19, %c0_20, %c0_21] : memref<5x1x32xf32, #tpu.memory_space<vmem>>, vector<1x1x32xf32>
    %25 = vector.shape_cast %24 : vector<1x1x32xf32> to vector<1x32xf32>
    %26 = vector.broadcast %25 : vector<1x32xf32> to vector<128x32xf32>
    %27 = arith.addf %23, %26 : vector<128x32xf32>
    %cst_22 = arith.constant 0.000000e+00 : f32
    %28 = vector.broadcast %cst_22 : f32 to vector<128x32xf32>
    %29 = arith.maximumf %27, %28 : vector<128x32xf32>
    %c3 = arith.constant 3 : index
    %c0_23 = arith.constant 0 : index
    %c0_24 = arith.constant 0 : index
    %30 = vector.load %arg2[%c3, %c0_23, %c0_24] : memref<5x32x32xf32, #tpu.memory_space<vmem>>, vector<1x32x32xf32>
    %31 = vector.shape_cast %30 : vector<1x32x32xf32> to vector<32x32xf32>
    %cst_25 = arith.constant dense<0.000000e+00> : vector<128x32xf32>
    %32 = tpu.matmul %29, %31, %cst_25 {dimension_numbers = #tpu.dot_dimension_numbers<[1], [0], [0], [1], [0, 0, 1, 1], [], []>} : vector<128x32xf32>, vector<32x32xf32>, vector<128x32xf32> -> vector<128x32xf32>
    %c3_26 = arith.constant 3 : index
    %c0_27 = arith.constant 0 : index
    %c0_28 = arith.constant 0 : index
    %33 = vector.load %arg3[%c3_26, %c0_27, %c0_28] : memref<5x1x32xf32, #tpu.memory_space<vmem>>, vector<1x1x32xf32>
    %34 = vector.shape_cast %33 : vector<1x1x32xf32> to vector<1x32xf32>
    %35 = vector.broadcast %34 : vector<1x32xf32> to vector<128x32xf32>
    %36 = arith.addf %32, %35 : vector<128x32xf32>
    %cst_29 = arith.constant 0.000000e+00 : f32
    %37 = vector.broadcast %cst_29 : f32 to vector<128x32xf32>
    %38 = arith.maximumf %36, %37 : vector<128x32xf32>
    %c4 = arith.constant 4 : index
    %c0_30 = arith.constant 0 : index
    %c0_31 = arith.constant 0 : index
    %39 = vector.load %arg2[%c4, %c0_30, %c0_31] : memref<5x32x32xf32, #tpu.memory_space<vmem>>, vector<1x32x32xf32>
    %40 = vector.shape_cast %39 : vector<1x32x32xf32> to vector<32x32xf32>
    %cst_32 = arith.constant dense<0.000000e+00> : vector<128x32xf32>
    %41 = tpu.matmul %38, %40, %cst_32 {dimension_numbers = #tpu.dot_dimension_numbers<[1], [0], [0], [1], [0, 0, 1, 1], [], []>} : vector<128x32xf32>, vector<32x32xf32>, vector<128x32xf32> -> vector<128x32xf32>
    %c4_33 = arith.constant 4 : index
    %c0_34 = arith.constant 0 : index
    %c0_35 = arith.constant 0 : index
    %42 = vector.load %arg3[%c4_33, %c0_34, %c0_35] : memref<5x1x32xf32, #tpu.memory_space<vmem>>, vector<1x1x32xf32>
    %43 = vector.shape_cast %42 : vector<1x1x32xf32> to vector<1x32xf32>
    %44 = vector.broadcast %43 : vector<1x32xf32> to vector<128x32xf32>
    %45 = arith.addf %41, %44 : vector<128x32xf32>
    %cst_36 = arith.constant 0.000000e+00 : f32
    %46 = vector.broadcast %cst_36 : f32 to vector<128x32xf32>
    %47 = arith.maximumf %45, %46 : vector<128x32xf32>
    %c0_37 = arith.constant 0 : index
    %c0_38 = arith.constant 0 : index
    %48 = vector.load %arg4[%c0_37, %c0_38] : memref<8x32xf32, #tpu.memory_space<vmem>>, vector<8x32xf32>
    %cst_39 = arith.constant dense<0.000000e+00> : vector<8x128xf32>
    %49 = tpu.matmul %48, %47, %cst_39 {dimension_numbers = #tpu.dot_dimension_numbers<[1], [1], [0], [0], [0, 0, 1, 0], [], []>} : vector<8x32xf32>, vector<128x32xf32>, vector<8x128xf32> -> vector<8x128xf32>
    %c0_40 = arith.constant 0 : index
    %c0_41 = arith.constant 0 : index
    %50 = vector.load %arg5[%c0_40, %c0_41] : memref<8x1xf32, #tpu.memory_space<vmem>>, vector<8x1xf32>
    %51 = vector.broadcast %50 : vector<8x1xf32> to vector<8x128xf32>
    %52 = arith.addf %49, %51 : vector<8x128xf32>
    %53 = arith.negf %52 : vector<8x128xf32>
    %54 = math.exp %53 : vector<8x128xf32>
    %cst_42 = arith.constant 1.000000e+00 : f32
    %55 = vector.broadcast %cst_42 : f32 to vector<8x128xf32>
    %56 = arith.addf %55, %54 : vector<8x128xf32>
    %57 = arith.divf %55, %56 : vector<8x128xf32>
    %c0_43 = arith.constant 0 : index
    %c0_44 = arith.constant 0 : index
    %58 = vector.load %arg6[%c0_43, %c0_44] : memref<8x128xf32, #tpu.memory_space<vmem>>, vector<8x128xf32>
    tpu.vector_store %arg6[%c0_43, %c0_44], %57 {strides = array<i32>} : memref<8x128xf32, #tpu.memory_space<vmem>>, vector<8x128xf32>,
    return
  }
  func.func @transform_0(%arg0: i32) -> (i32, i32) {
    %c0_i32 = arith.constant 0 : i32
    %c0_i32_0 = arith.constant 0 : i32
    return %arg0, %c0_i32 : i32, i32
  }
  func.func @transform_1(%arg0: i32) -> (i32, i32, i32) {
    %c0_i32 = arith.constant 0 : i32
    %c0_i32_0 = arith.constant 0 : i32
    %c0_i32_1 = arith.constant 0 : i32
    %c0_i32_2 = arith.constant 0 : i32
    return %c0_i32, %c0_i32_0, %c0_i32_1 : i32, i32, i32
  }
  func.func @transform_2(%arg0: i32) -> (i32, i32, i32) {
    %c0_i32 = arith.constant 0 : i32
    %c0_i32_0 = arith.constant 0 : i32
    %c0_i32_1 = arith.constant 0 : i32
    %c0_i32_2 = arith.constant 0 : i32
    return %c0_i32, %c0_i32_0, %c0_i32_1 : i32, i32, i32
  }
  func.func @transform_3(%arg0: i32) -> (i32, i32) {
    %c0_i32 = arith.constant 0 : i32
    %c0_i32_0 = arith.constant 0 : i32
    %c0_i32_1 = arith.constant 0 : i32
    return %c0_i32, %c0_i32_0 : i32, i32
  }
  func.func @transform_4(%arg0: i32) -> (i32, i32) {
    %c0_i32 = arith.constant 0 : i32
    %c0_i32_0 = arith.constant 0 : i32
    %c0_i32_1 = arith.constant 0 : i32
    return %c0_i32, %c0_i32_0 : i32, i32
  }
  func.func @transform_5(%arg0: i32) -> (i32, i32) {
    %c0_i32 = arith.constant 0 : i32
    %c0_i32_0 = arith.constant 0 : i32
    return %c0_i32, %arg0 : i32, i32
  }
}

</mosaic_0001>

<bundles_post_ra>
// kernel: mlp_forward.1
= control target key start
LH: loop header
LB: loop body
LE: loop exit
PB: predicated region body
PF: predicated region fallthrough
CT: control target
= control target key end

     0   :  { %s2057_s18 = smov 0   ;;  %s2317_s0 = inlined_call_operand.vmem [shape: f32[256,4], index: 0, kind: input, shape index: {}]   ;;  %s2318_s1 = inlined_call_operand.vmem [shape: f32[5,32,32], index: 1, kind: input, shape index: {}]   ;;  %s2319_s2 = inlined_call_operand.vmem [shape: f32[5,1,32], index: 2, kind: input, shape index: {}]   ;;  %s2320_s3 = inlined_call_operand.vmem [shape: f32[8,32], index: 3, kind: input, shape index: {}]   ;;  %s2321_s4 = inlined_call_operand.vmem [shape: f32[8,1], index: 4, kind: input, shape index: {}]   ;;  %s2322_s5 = inlined_call_operand.vmem [shape: f32[8,256], index: 5, kind: output, shape index: {}]  }
   0x1 LB: > { %s2063_s19 = sadd.s32 4294967295, %s2022_s18   ;;  %p1559_p0 = scmp.ge.s32.totalorder %s2022_s18, 1  ;;  %s2022_s18 = sphi %s2057_s18, %s15_s18  }
   0x2   : > { %p188_p1 = scmp.lt.s32.totalorder %s2022_s18, 3 }
   0x4   : > { %p189_p2 = pnand %p1559_p0, %p188_p1 }
   0x5   : > { %s1560_s24 = sshll.u32 (!%p189_p2), %s2063_s19, 4  ;;  %p221_p4 = scmp.lt.s32.totalorder (!%p189_p2), %s2063_s19, 1 }
   0x6   : > { %192 = sbr.rel (%p189_p2) target bundleno = 1336 (0x538), region = 40  ;;  %p216_p3 = scmp.lt.s32.totalorder (!%p189_p2), %s1560_s24, 31 }
   0xb   : > { %v261_v0 = vld [vmem:[%s2318_s1 + $0x18] sm:$0xff]  ;;  %v260_v1 = vld [vmem:[%s2318_s1 + $0x10] sm:$0xff]  ;;  %v259_v2 = vld [vmem:[%s2318_s1 + $0x8] sm:$0xff]  ;;  %s2324_s24 = smov (!%p216_p3, %s1560_s24), 31  ;;  %vm241_vm0 = vcmask 31744   ;;  %vm269_vm1 = vcmask 261120  }
   0xc   : > { %1805 = vmatprep.subr.mxu0 %v261_v0  ;;  %v258_v3 = vld [vmem:[%s2318_s1] sm:$0xff]  ;;  %s1561_s29 = sshll.u32 %s2324_s24, 3  ;;  %v1583_v36 = vld [vmem:[%s2318_s1 + $0x38] sm:$0xff]  ;;  %v1582_v37 = vld [vmem:[%s2318_s1 + $0x30] sm:$0xff]  ;;  %vm2025_vm2 = vmmov 0   ;;  %s2326_s19 = smov (!%p221_p4, %s2063_s19), 1 }
   0xd   : > { %1806 = vmatpush3.msra.mxu0 %v261_v0  ;;  %s2083_s7 = scalar_lea.vmem %s2317_s0, %s1561_s29  ;;  %1837 = vmatprep.subr.mxu1 %v1583_v36  ;;  %v1581_v38 = vld [vmem:[%s2318_s1 + $0x28] sm:$0xff]  ;;  %v1580_v39 = vld [vmem:[%s2318_s1 + $0x20] sm:$0xff]  ;;  %v1605_v40 = vld [vmem:[%s2318_s1 + $0x58] sm:$0xff]  ;;  %s1562_s8 = sshll.u32 %s2326_s19, 3 }
   0xe   : > { %1807 = vmatprep.subr.mxu0 %v260_v1  ;;  %v225_v4 = vld [vmem:[%s2083_s7] sm:$0xff]  ;;  %v226_v5 = vld [vmem:[%s2083_s7 + $0x8] sm:$0xff]  ;;  %v227_v6 = vld [vmem:[%s2083_s7 + $0x10] sm:$0xff]  ;;  %1838 = vmatpush3.msra.mxu1 %v1583_v36  ;;  %s224_s11 = scalar_lea.vmem %s2322_s5, %s1562_s8 }
   0xf   : > { %1808 = vmatpush3.msra.mxu0 %v260_v1  ;;  %v242_v7 = vsel %vm241_vm0, %v225_v4, 0.0  ;;  %v243_v8 = vsel %vm241_vm0, %v226_v5, 0.0  ;;  %v244_v9 = vsel %vm241_vm0, %v227_v6, 0.0  ;;  %v228_v10 = vld [vmem:[%s2083_s7 + $0x18] sm:$0xff]  ;;  %v229_v11 = vld [vmem:[%s2083_s7 + $0x20] sm:$0xff]  ;;  %v230_v14 = vld [vmem:[%s2083_s7 + $0x28] sm:$0xff]  ;;  %1839 = vmatprep.subr.mxu1 %v1582_v37 }
  0x10   : > { %1809 = vmatprep.subr.mxu0 %v259_v2  ;;  %1813 = vmatprep.mubr.msk.f32.mxu0 %vm269_vm1, %v242_v7  ;;  %v245_v12 = vsel %vm241_vm0, %v228_v10, 0.0  ;;  %v246_v13 = vsel %vm241_vm0, %v229_v11, 0.0  ;;  %v231_v15 = vld [vmem:[%s2083_s7 + $0x30] sm:$0xff]  ;;  %v247_v16 = vsel %vm241_vm0, %v230_v14, 0.0  ;;  %v232_v18 = vld [vmem:[%s2083_s7 + $0x38] sm:$0xff]  ;;  %v233_v19 = vld [vmem:[%s2083_s7 + $0x40] sm:$0xff] }
  0x11   : > { %1810 = vmatpush3.msra.mxu0 %v259_v2  ;;  %v248_v17 = vsel %vm241_vm0, %v231_v15, 0.0  ;;  %v249_v20 = vsel %vm241_vm0, %v232_v18, 0.0  ;;  %v250_v21 = vsel %vm241_vm0, %v233_v19, 0.0  ;;  %v234_v22 = vld [vmem:[%s2083_s7 + $0x48] sm:$0xff]  ;;  %v235_v23 = vld [vmem:[%s2083_s7 + $0x50] sm:$0xff]  ;;  %v236_v26 = vld [vmem:[%s2083_s7 + $0x58] sm:$0xff]  ;;  %1840 = vmatpush3.msra.mxu1 %v1582_v37 }
  0x12   : > { %1811 = vmatprep.subr.mxu0 %v258_v3  ;;  %v251_v24 = vsel %vm241_vm0, %v234_v22, 0.0  ;;  %v252_v25 = vsel %vm241_vm0, %v235_v23, 0.0  ;;  %v237_v27 = vld [vmem:[%s2083_s7 + $0x60] sm:$0xff]  ;;  %v253_v28 = vsel %vm241_vm0, %v236_v26, 0.0  ;;  %v238_v30 = vld [vmem:[%s2083_s7 + $0x68] sm:$0xff]  ;;  %v239_v31 = vld [vmem:[%s2083_s7 + $0x70] sm:$0xff]  ;;  %1841 = vmatprep.subr.mxu1 %v1581_v38 }
  0x13   : > { %1812 = vmatpush3.msra.mxu0 %v258_v3  ;;  %v254_v29 = vsel %vm241_vm0, %v237_v27, 0.0  ;;  %v255_v32 = vsel %vm241_vm0, %v238_v30, 0.0  ;;  %v256_v33 = vsel %vm241_vm0, %v239_v31, 0.0  ;;  %v240_v34 = vld [vmem:[%s2083_s7 + $0x78] sm:$0xff]  ;;  %1842 = vmatpush3.msra.mxu1 %v1581_v38  ;;  %v1604_v41 = vld [vmem:[%s2318_s1 + $0x50] sm:$0xff]  ;;  %v1603_v42 = vld [vmem:[%s2318_s1 + $0x48] sm:$0xff] }
  0x14   : > { %1814 = vmatmul.mubr.msk.f32.vlgmr.msra.gmra.mxu0 %vm269_vm1, %v243_v8  ;;  %v257_v35 = vsel %vm241_vm0, %v240_v34, 0.0  ;;  %1843 = vmatprep.subr.mxu1 %v1580_v39  ;;  %v1602_v43 = vld [vmem:[%s2318_s1 + $0x40] sm:$0xff]  ;;  %v1626_v30 = vld [vmem:[%s2318_s1 + $0x70] sm:$0xff]  ;;  %v1625_v31 = vld [vmem:[%s2318_s1 + $0x68] sm:$0xff] }
  0x15   : > { %1816 = vmatprep.mubr.msk.f32.mxu0 %vm269_vm1, %v244_v9  ;;  %1844 = vmatpush3.msra.mxu1 %v1580_v39  ;;  %v1563_v44 = vld [vmem:[%s2319_s2] ss:$0 sm:$0xff] }
  0x16   : > { %1869 = vmatprep.subr.mxu0 %v1605_v40 }
  0x17   : > { %1870 = vmatpush3.msra.mxu0 %v1605_v40 }
  0x18   : > { %1817 = vmatmul.mubr.msk.f32.gmra.mxu0 %vm269_vm1, %v245_v12  ;;  %1871 = vmatprep.subr.mxu0 %v1604_v41 }
  0x19   : > { %1819 = vmatprep.mubr.msk.f32.mxu0 %vm269_vm1, %v246_v13  ;;  %1872 = vmatpush3.msra.mxu0 %v1604_v41 }
  0x1a   : > { %1873 = vmatprep.subr.mxu0 %v1603_v42 }
  0x1b   : > { %1874 = vmatpush3.msra.mxu0 %v1603_v42 }
  0x1c   : > { %1820 = vmatmul.mubr.msk.f32.gmra.mxu0 %vm269_vm1, %v247_v16  ;;  %1875 = vmatprep.subr.mxu0 %v1602_v43 }
  0x1d   : > { %1822 = vmatprep.mubr.msk.f32.mxu0 %vm269_vm1, %v248_v17  ;;  %1876 = vmatpush3.msra.mxu0 %v1602_v43 }
  0x20   : > { %1823 = vmatmul.mubr.msk.f32.gmra.mxu0 %vm269_vm1, %v249_v20 }
  0x21   : > { %1825 = vmatprep.mubr.msk.f32.mxu0 %vm269_vm1, %v250_v21 }
  0x24   : > { %1826 = vmatmul.mubr.msk.f32.gmra.mxu0 %vm269_vm1, %v251_v24 }
  0x25   : > { %1828 = vmatprep.mubr.msk.f32.mxu0 %vm269_vm1, %v252_v25 }
  0x28   : > { %1829 = vmatmul.mubr.msk.f32.gmra.mxu0 %vm269_vm1, %v253_v28 }
  0x29   : > { %1831 = vmatprep.mubr.msk.f32.mxu0 %vm269_vm1, %v254_v29  ;;  %v1627_v29 = vld [vmem:[%s2318_s1 + $0x78] sm:$0xff] }
  0x2a   : > { %1901 = vmatprep.subr.mxu1 %v1627_v29 }
  0x2c   : > { %1832 = vmatmul.mubr.msk.f32.gmra.mxu0 %vm269_vm1, %v255_v32  ;;  %v1624_v32 = vld [vmem:[%s2318_s1 + $0x60] sm:$0xff] }
  0x2d   : > { %1834 = vmatprep.mubr.msk.f32.mxu0 %vm269_vm1, %v256_v33  ;;  %v1585_v33 = vld [vmem:[%s2319_s2 + $0x1] ss:$0 sm:$0xff] }
  0x30   : > { %1835 = vmatmul.mubr.msk.f32.gmra.mxu0 %vm269_vm1, %v257_v35 }
  0xd4   : > { %v1815_v45 = vpop.f32.mrf.mxu0 }
  0xd5   : > { %v390_v46 = vadd.f32 %v1815_v45, %v1563_v44 }
  0xd6   : > { %v384_v47 = vpop.f32.mrf.mxu0 }
  0xd7   : > { %v385_v48 = vadd.f32 %v1563_v44, %v384_v47  ;;  %v464_v51 = vmax.f32 %v390_v46, 0.0 }
  0xd8   : > { %v1818_v49 = vpop.f32.mrf.mxu0 }
  0xd9   : > { %v463_v50 = vmax.f32 %v385_v48, 0.0  ;;  %v400_v52 = vadd.f32 %v1818_v49, %v1563_v44 }
  0xda   : > { %v394_v53 = vpop.f32.mrf.mxu0 }
  0xdb   : > { %v395_v54 = vadd.f32 %v1563_v44, %v394_v53  ;;  %1845 = vmatprep.mubr.msk.f32.mxu1 %vm269_vm1, %v463_v50  ;;  %v466_v57 = vmax.f32 %v400_v52, 0.0 }
  0xdc   : > { %v1821_v55 = vpop.f32.mrf.mxu0  ;;  %1846 = vmatmul.mubr.msk.f32.vlgmr.msra.gmra.mxu1 %vm269_vm1, %v464_v51 }
  0xdd   : > { %v465_v56 = vmax.f32 %v395_v54, 0.0  ;;  %v410_v58 = vadd.f32 %v1821_v55, %v1563_v44  ;;  %1902 = vmatpush3.msra.mxu1 %v1627_v29 }
  0xde   : > { %v404_v59 = vpop.f32.mrf.mxu0  ;;  %1903 = vmatprep.subr.mxu1 %v1626_v30 }
  0xdf   : > { %v405_v60 = vadd.f32 %v1563_v44, %v404_v59  ;;  %1848 = vmatprep.mubr.msk.f32.mxu1 %vm269_vm1, %v465_v56  ;;  %v468_v63 = vmax.f32 %v410_v58, 0.0  ;;  %1904 = vmatpush3.msra.mxu1 %v1626_v30 }
  0xe0   : > { %v1824_v61 = vpop.f32.mrf.mxu0  ;;  %1849 = vmatmul.mubr.msk.f32.gmra.mxu1 %vm269_vm1, %v466_v57  ;;  %1905 = vmatprep.subr.mxu1 %v1625_v31 }
  0xe1   : > { %v467_v62 = vmax.f32 %v405_v60, 0.0  ;;  %v420_v0 = vadd.f32 %v1824_v61, %v1563_v44  ;;  %1906 = vmatpush3.msra.mxu1 %v1625_v31 }
  0xe2   : > { %v414_v1 = vpop.f32.mrf.mxu0  ;;  %1907 = vmatprep.subr.mxu1 %v1624_v32 }
  0xe3   : > { %v415_v2 = vadd.f32 %v1563_v44, %v414_v1  ;;  %1851 = vmatprep.mubr.msk.f32.mxu1 %vm269_vm1, %v467_v62  ;;  %v470_v5 = vmax.f32 %v420_v0, 0.0  ;;  %1908 = vmatpush3.msra.mxu1 %v1624_v32 }
  0xe4   : > { %v1827_v3 = vpop.f32.mrf.mxu0  ;;  %1852 = vmatmul.mubr.msk.f32.gmra.mxu1 %vm269_vm1, %v468_v63 }
  0xe5   : > { %v469_v4 = vmax.f32 %v415_v2, 0.0  ;;  %v430_v6 = vadd.f32 %v1827_v3, %v1563_v44 }
  0xe6   : > { %v424_v7 = vpop.f32.mrf.mxu0 }
  0xe7   : > { %v425_v8 = vadd.f32 %v1563_v44, %v424_v7  ;;  %1854 = vmatprep.mubr.msk.f32.mxu1 %vm269_vm1, %v469_v4  ;;  %v472_v11 = vmax.f32 %v430_v6, 0.0 }
  0xe8   : > { %v1830_v9 = vpop.f32.mrf.mxu0  ;;  %1855 = vmatmul.mubr.msk.f32.gmra.mxu1 %vm269_vm1, %v470_v5 }
  0xe9   : > { %v471_v10 = vmax.f32 %v425_v8, 0.0  ;;  %v440_v12 = vadd.f32 %v1830_v9, %v1563_v44 }
  0xea   : > { %v434_v13 = vpop.f32.mrf.mxu0 }
  0xeb   : > { %v435_v14 = vadd.f32 %v1563_v44, %v434_v13  ;;  %1857 = vmatprep.mubr.msk.f32.mxu1 %vm269_vm1, %v471_v10  ;;  %v474_v17 = vmax.f32 %v440_v12, 0.0 }
  0xec   : > { %v1833_v15 = vpop.f32.mrf.mxu0  ;;  %1858 = vmatmul.mubr.msk.f32.gmra.mxu1 %vm269_vm1, %v472_v11 }
  0xed   : > { %v473_v16 = vmax.f32 %v435_v14, 0.0  ;;  %v450_v18 = vadd.f32 %v1833_v15, %v1563_v44 }
  0xee   : > { %v444_v19 = vpop.f32.mrf.mxu0 }
  0xef   : > { %v445_v20 = vadd.f32 %v1563_v44, %v444_v19  ;;  %1860 = vmatprep.mubr.msk.f32.mxu1 %vm269_vm1, %v473_v16  ;;  %v476_v23 = vmax.f32 %v450_v18, 0.0  ;;  %v1649_v18 = vld [vmem:[%s2318_s1 + $0x98] sm:$0xff]  ;;  %v1648_v19 = vld [vmem:[%s2318_s1 + $0x90] sm:$0xff] }
  0xf0   : > { %v1836_v21 = vpop.f32.mrf.mxu0  ;;  %1861 = vmatmul.mubr.msk.f32.gmra.mxu1 %vm269_vm1, %v474_v17  ;;  %1933 = vmatprep.subr.mxu0 %v1649_v18 }
  0xf1   : > { %v475_v22 = vmax.f32 %v445_v20, 0.0  ;;  %v460_v24 = vadd.f32 %v1836_v21, %v1563_v44  ;;  %v1647_v20 = vld [vmem:[%s2318_s1 + $0x88] sm:$0xff]  ;;  %v1646_v21 = vld [vmem:[%s2318_s1 + $0x80] sm:$0xff] }
  0xf2   : > { %v454_v25 = vpop.f32.mrf.mxu0 }
  0xf3   : > { %v455_v26 = vadd.f32 %v1563_v44, %v454_v25  ;;  %1863 = vmatprep.mubr.msk.f32.mxu1 %vm269_vm1, %v475_v22  ;;  %v478_v28 = vmax.f32 %v460_v24, 0.0  ;;  %v1607_v22 = vld [vmem:[%s2319_s2 + $0x2] ss:$0 sm:$0xff] }
  0xf4   : > { %1864 = vmatmul.mubr.msk.f32.gmra.mxu1 %vm269_vm1, %v476_v23 }
  0xf5   : > { %v477_v27 = vmax.f32 %v455_v26, 0.0 }
  0xf7   : > { %1866 = vmatprep.mubr.msk.f32.mxu1 %vm269_vm1, %v477_v27 }
  0xf8   : > { %1867 = vmatmul.mubr.msk.f32.gmra.mxu1 %vm269_vm1, %v478_v28 }
 0x19c   : > { %v1847_v34 = vpop.f32.mrf.mxu1 }
 0x19d   : > { %v612_v35 = vadd.f32 %v1847_v34, %v1585_v33 }
 0x19e   : > { %v606_v36 = vpop.f32.mrf.mxu1 }
 0x19f   : > { %v607_v37 = vadd.f32 %v1585_v33, %v606_v36  ;;  %v686_v40 = vmax.f32 %v612_v35, 0.0 }
 0x1a0   : > { %v1850_v38 = vpop.f32.mrf.mxu1 }
 0x1a1   : > { %v685_v39 = vmax.f32 %v607_v37, 0.0  ;;  %v622_v41 = vadd.f32 %v1850_v38, %v1585_v33 }
 0x1a2   : > { %v616_v42 = vpop.f32.mrf.mxu1 }
 0x1a3   : > { %v617_v43 = vadd.f32 %v1585_v33, %v616_v42  ;;  %1877 = vmatprep.mubr.msk.f32.mxu0 %vm269_vm1, %v685_v39  ;;  %v688_v46 = vmax.f32 %v622_v41, 0.0 }
 0x1a4   : > { %v1853_v44 = vpop.f32.mrf.mxu1  ;;  %1878 = vmatmul.mubr.msk.f32.vlgmr.msra.gmra.mxu0 %vm269_vm1, %v686_v40 }
 0x1a5   : > { %v687_v45 = vmax.f32 %v617_v43, 0.0  ;;  %v632_v47 = vadd.f32 %v1853_v44, %v1585_v33  ;;  %1934 = vmatpush3.msra.mxu0 %v1649_v18 }
 0x1a6   : > { %v626_v48 = vpop.f32.mrf.mxu1  ;;  %1935 = vmatprep.subr.mxu0 %v1648_v19 }
 0x1a7   : > { %v627_v49 = vadd.f32 %v1585_v33, %v626_v48  ;;  %1880 = vmatprep.mubr.msk.f32.mxu0 %vm269_vm1, %v687_v45  ;;  %v690_v52 = vmax.f32 %v632_v47, 0.0  ;;  %1936 = vmatpush3.msra.mxu0 %v1648_v19 }
 0x1a8   : > { %v1856_v50 = vpop.f32.mrf.mxu1  ;;  %1881 = vmatmul.mubr.msk.f32.gmra.mxu0 %vm269_vm1, %v688_v46  ;;  %1937 = vmatprep.subr.mxu0 %v1647_v20 }
 0x1a9   : > { %v689_v51 = vmax.f32 %v627_v49, 0.0  ;;  %v642_v53 = vadd.f32 %v1856_v50, %v1585_v33  ;;  %1938 = vmatpush3.msra.mxu0 %v1647_v20 }
 0x1aa   : > { %v636_v54 = vpop.f32.mrf.mxu1  ;;  %1939 = vmatprep.subr.mxu0 %v1646_v21 }
 0x1ab   : > { %v637_v55 = vadd.f32 %v1585_v33, %v636_v54  ;;  %1883 = vmatprep.mubr.msk.f32.mxu0 %vm269_vm1, %v689_v51  ;;  %v692_v58 = vmax.f32 %v642_v53, 0.0  ;;  %1940 = vmatpush3.msra.mxu0 %v1646_v21 }
 0x1ac   : > { %v1859_v56 = vpop.f32.mrf.mxu1  ;;  %1884 = vmatmul.mubr.msk.f32.gmra.mxu0 %vm269_vm1, %v690_v52 }
 0x1ad   : > { %v691_v57 = vmax.f32 %v637_v55, 0.0  ;;  %v652_v59 = vadd.f32 %v1859_v56, %v1585_v33 }
 0x1ae   : > { %v646_v60 = vpop.f32.mrf.mxu1 }
 0x1af   : > { %v647_v61 = vadd.f32 %v1585_v33, %v646_v60  ;;  %1886 = vmatprep.mubr.msk.f32.mxu0 %vm269_vm1, %v691_v57  ;;  %v694_v0 = vmax.f32 %v652_v59, 0.0 }
 0x1b0   : > { %v1862_v62 = vpop.f32.mrf.mxu1  ;;  %1887 = vmatmul.mubr.msk.f32.gmra.mxu0 %vm269_vm1, %v692_v58 }
 0x1b1   : > { %v693_v63 = vmax.f32 %v647_v61, 0.0  ;;  %v662_v1 = vadd.f32 %v1862_v62, %v1585_v33 }
 0x1b2   : > { %v656_v2 = vpop.f32.mrf.mxu1 }
 0x1b3   : > { %v657_v3 = vadd.f32 %v1585_v33, %v656_v2  ;;  %1889 = vmatprep.mubr.msk.f32.mxu0 %vm269_vm1, %v693_v63  ;;  %v696_v6 = vmax.f32 %v662_v1, 0.0 }
 0x1b4   : > { %v1865_v4 = vpop.f32.mrf.mxu1  ;;  %1890 = vmatmul.mubr.msk.f32.gmra.mxu0 %vm269_vm1, %v694_v0 }
 0x1b5   : > { %v695_v5 = vmax.f32 %v657_v3, 0.0  ;;  %v672_v7 = vadd.f32 %v1865_v4, %v1585_v33 }
 0x1b6   : > { %v666_v8 = vpop.f32.mrf.mxu1 }
 0x1b7   : > { %v667_v9 = vadd.f32 %v1585_v33, %v666_v8  ;;  %1892 = vmatprep.mubr.msk.f32.mxu0 %vm269_vm1, %v695_v5  ;;  %v698_v12 = vmax.f32 %v672_v7, 0.0  ;;  %v1629_v7 = vld [vmem:[%s2319_s2 + $0x3] ss:$0 sm:$0xff] }
 0x1b8   : > { %v1868_v10 = vpop.f32.mrf.mxu1  ;;  %1893 = vmatmul.mubr.msk.f32.gmra.mxu0 %vm269_vm1, %v696_v6 }
 0x1b9   : > { %v697_v11 = vmax.f32 %v667_v9, 0.0  ;;  %v682_v13 = vadd.f32 %v1868_v10, %v1585_v33 }
 0x1ba   : > { %v676_v14 = vpop.f32.mrf.mxu1 }
 0x1bb   : > { %v677_v15 = vadd.f32 %v1585_v33, %v676_v14  ;;  %1895 = vmatprep.mubr.msk.f32.mxu0 %vm269_vm1, %v697_v11  ;;  %v700_v17 = vmax.f32 %v682_v13, 0.0 }
 0x1bc   : > { %1896 = vmatmul.mubr.msk.f32.gmra.mxu0 %vm269_vm1, %v698_v12 }
 0x1bd   : > { %v699_v16 = vmax.f32 %v677_v15, 0.0 }
 0x1bf   : > { %1898 = vmatprep.mubr.msk.f32.mxu0 %vm269_vm1, %v699_v16 }
 0x1c0   : > { %1899 = vmatmul.mubr.msk.f32.gmra.mxu0 %vm269_vm1, %v700_v17 }
 0x264   : > { %v1879_v23 = vpop.f32.mrf.mxu0 }
 0x265   : > { %v834_v24 = vadd.f32 %v1879_v23, %v1607_v22 }
 0x266   : > { %v828_v25 = vpop.f32.mrf.mxu0 }
 0x267   : > { %v829_v26 = vadd.f32 %v1607_v22, %v828_v25  ;;  %v908_v29 = vmax.f32 %v834_v24, 0.0 }
 0x268   : > { %v1882_v27 = vpop.f32.mrf.mxu0 }
 0x269   : > { %v907_v28 = vmax.f32 %v829_v26, 0.0  ;;  %v844_v30 = vadd.f32 %v1882_v27, %v1607_v22 }
 0x26a   : > { %v838_v31 = vpop.f32.mrf.mxu0 }
 0x26b   : > { %v839_v32 = vadd.f32 %v1607_v22, %v838_v31  ;;  %1909 = vmatprep.mubr.msk.f32.mxu1 %vm269_vm1, %v907_v28  ;;  %v910_v35 = vmax.f32 %v844_v30, 0.0 }
 0x26c   : > { %v1885_v33 = vpop.f32.mrf.mxu0  ;;  %1910 = vmatmul.mubr.msk.f32.vlgmr.msra.gmra.mxu1 %vm269_vm1, %v908_v29 }
 0x26d   : > { %v909_v34 = vmax.f32 %v839_v32, 0.0  ;;  %v854_v36 = vadd.f32 %v1885_v33, %v1607_v22 }
 0x26e   : > { %v848_v37 = vpop.f32.mrf.mxu0 }
 0x26f   : > { %v849_v38 = vadd.f32 %v1607_v22, %v848_v37  ;;  %1912 = vmatprep.mubr.msk.f32.mxu1 %vm269_vm1, %v909_v34  ;;  %v912_v41 = vmax.f32 %v854_v36, 0.0 }
 0x270   : > { %v1888_v39 = vpop.f32.mrf.mxu0  ;;  %1913 = vmatmul.mubr.msk.f32.gmra.mxu1 %vm269_vm1, %v910_v35 }
 0x271   : > { %v911_v40 = vmax.f32 %v849_v38, 0.0  ;;  %v864_v42 = vadd.f32 %v1888_v39, %v1607_v22 }
 0x272   : > { %v858_v43 = vpop.f32.mrf.mxu0 }
 0x273   : > { %v859_v44 = vadd.f32 %v1607_v22, %v858_v43  ;;  %1915 = vmatprep.mubr.msk.f32.mxu1 %vm269_vm1, %v911_v40  ;;  %v914_v47 = vmax.f32 %v864_v42, 0.0 }
 0x274   : > { %v1891_v45 = vpop.f32.mrf.mxu0  ;;  %1916 = vmatmul.mubr.msk.f32.gmra.mxu1 %vm269_vm1, %v912_v41 }
 0x275   : > { %v913_v46 = vmax.f32 %v859_v44, 0.0  ;;  %v874_v48 = vadd.f32 %v1891_v45, %v1607_v22 }
 0x276   : > { %v868_v49 = vpop.f32.mrf.mxu0 }
 0x277   : > { %v869_v50 = vadd.f32 %v1607_v22, %v868_v49  ;;  %1918 = vmatprep.mubr.msk.f32.mxu1 %vm269_vm1, %v913_v46  ;;  %v916_v53 = vmax.f32 %v874_v48, 0.0 }
 0x278   : > { %v1894_v51 = vpop.f32.mrf.mxu0  ;;  %1919 = vmatmul.mubr.msk.f32.gmra.mxu1 %vm269_vm1, %v914_v47 }
 0x279   : > { %v915_v52 = vmax.f32 %v869_v50, 0.0  ;;  %v884_v54 = vadd.f32 %v1894_v51, %v1607_v22 }
 0x27a   : > { %v878_v55 = vpop.f32.mrf.mxu0 }
 0x27b   : > { %v879_v56 = vadd.f32 %v1607_v22, %v878_v55  ;;  %1921 = vmatprep.mubr.msk.f32.mxu1 %vm269_vm1, %v915_v52  ;;  %v918_v59 = vmax.f32 %v884_v54, 0.0 }
 0x27c   : > { %v1897_v57 = vpop.f32.mrf.mxu0  ;;  %1922 = vmatmul.mubr.msk.f32.gmra.mxu1 %vm269_vm1, %v916_v53 }
 0x27d   : > { %v917_v58 = vmax.f32 %v879_v56, 0.0  ;;  %v894_v60 = vadd.f32 %v1897_v57, %v1607_v22  ;;  %v2024_v56 = vmov 0.0   ;;  %v1368_v57 = vld [vmem:[%s2321_s4] sm:$0xff] }
 0x27e   : > { %v888_v61 = vpop.f32.mrf.mxu0  ;;  %1965 = vmatprep.subr.mxu1 %v2024_v56 }
 0x27f   : > { %v889_v62 = vadd.f32 %v1607_v22, %v888_v61  ;;  %1924 = vmatprep.mubr.msk.f32.mxu1 %vm269_vm1, %v917_v58  ;;  %v920_v1 = vmax.f32 %v894_v60, 0.0  ;;  %v2026_v58 = vmov 0  }
 0x280   : > { %v1900_v63 = vpop.f32.mrf.mxu0  ;;  %1925 = vmatmul.mubr.msk.f32.gmra.mxu1 %vm269_vm1, %v918_v59  ;;  %2011 = vset.pattern.permute.xlu0 %v2026_v58 }
 0x281   : > { %v919_v0 = vmax.f32 %v889_v62, 0.0  ;;  %v904_v2 = vadd.f32 %v1900_v63, %v1607_v22  ;;  %1371 = vperm.xlu0 %2011, %v1368_v57  }
 0x282   : > { %v898_v3 = vpop.f32.mrf.mxu0 }
 0x283   : > { %v899_v4 = vadd.f32 %v1607_v22, %v898_v3  ;;  %1927 = vmatprep.mubr.msk.f32.mxu1 %vm269_vm1, %v919_v0  ;;  %v922_v6 = vmax.f32 %v904_v2, 0.0 }
 0x284   : > { %1928 = vmatmul.mubr.msk.f32.gmra.mxu1 %vm269_vm1, %v920_v1 }
 0x285   : > { %v921_v5 = vmax.f32 %v899_v4, 0.0 }
 0x287   : > { %1930 = vmatprep.mubr.msk.f32.mxu1 %vm269_vm1, %v921_v5 }
 0x288   : > { %1931 = vmatmul.mubr.msk.f32.gmra.mxu1 %vm269_vm1, %v922_v6 }
 0x289   : > { %1997 = vmatprep.mubr.msk.f32.mxu1 %vm2025_vm2, %v2024_v56 }
 0x32c   : > { %v1911_v8 = vpop.f32.mrf.mxu1 }
 0x32d   : > { %v1056_v9 = vadd.f32 %v1911_v8, %v1629_v7 }
 0x32e   : > { %v1050_v10 = vpop.f32.mrf.mxu1 }
 0x32f   : > { %v1051_v11 = vadd.f32 %v1629_v7, %v1050_v10  ;;  %v1130_v14 = vmax.f32 %v1056_v9, 0.0  ;;  %v1651_v9 = vld [vmem:[%s2319_s2 + $0x4] ss:$0 sm:$0xff] }
 0x330   : > { %v1914_v12 = vpop.f32.mrf.mxu1 }
 0x331   : > { %v1129_v13 = vmax.f32 %v1051_v11, 0.0  ;;  %v1066_v15 = vadd.f32 %v1914_v12, %v1629_v7 }
 0x332   : > { %v1060_v16 = vpop.f32.mrf.mxu1 }
 0x333   : > { %v1061_v17 = vadd.f32 %v1629_v7, %v1060_v16  ;;  %1941 = vmatprep.mubr.msk.f32.mxu0 %vm269_vm1, %v1129_v13  ;;  %v1132_v20 = vmax.f32 %v1066_v15, 0.0 }
 0x334   : > { %v1917_v18 = vpop.f32.mrf.mxu1  ;;  %1942 = vmatmul.mubr.msk.f32.vlgmr.msra.gmra.mxu0 %vm269_vm1, %v1130_v14 }
 0x335   : > { %v1131_v19 = vmax.f32 %v1061_v17, 0.0  ;;  %v1076_v21 = vadd.f32 %v1917_v18, %v1629_v7 }
 0x336   : > { %v1070_v22 = vpop.f32.mrf.mxu1 }
 0x337   : > { %v1071_v23 = vadd.f32 %v1629_v7, %v1070_v22  ;;  %1944 = vmatprep.mubr.msk.f32.mxu0 %vm269_vm1, %v1131_v19  ;;  %v1134_v26 = vmax.f32 %v1076_v21, 0.0 }
 0x338   : > { %v1920_v24 = vpop.f32.mrf.mxu1  ;;  %1945 = vmatmul.mubr.msk.f32.gmra.mxu0 %vm269_vm1, %v1132_v20 }
 0x339   : > { %v1133_v25 = vmax.f32 %v1071_v23, 0.0  ;;  %v1086_v27 = vadd.f32 %v1920_v24, %v1629_v7 }
 0x33a   : > { %v1080_v28 = vpop.f32.mrf.mxu1 }
 0x33b   : > { %v1081_v29 = vadd.f32 %v1629_v7, %v1080_v28  ;;  %1947 = vmatprep.mubr.msk.f32.mxu0 %vm269_vm1, %v1133_v25  ;;  %v1136_v32 = vmax.f32 %v1086_v27, 0.0 }
 0x33c   : > { %v1923_v30 = vpop.f32.mrf.mxu1  ;;  %1948 = vmatmul.mubr.msk.f32.gmra.mxu0 %vm269_vm1, %v1134_v26 }
 0x33d   : > { %v1135_v31 = vmax.f32 %v1081_v29, 0.0  ;;  %v1096_v33 = vadd.f32 %v1923_v30, %v1629_v7 }
 0x33e   : > { %v1090_v34 = vpop.f32.mrf.mxu1 }
 0x33f   : > { %v1091_v35 = vadd.f32 %v1629_v7, %v1090_v34  ;;  %1950 = vmatprep.mubr.msk.f32.mxu0 %vm269_vm1, %v1135_v31  ;;  %v1138_v38 = vmax.f32 %v1096_v33, 0.0 }
 0x340   : > { %v1926_v36 = vpop.f32.mrf.mxu1  ;;  %1951 = vmatmul.mubr.msk.f32.gmra.mxu0 %vm269_vm1, %v1136_v32 }
 0x341   : > { %v1137_v37 = vmax.f32 %v1091_v35, 0.0  ;;  %v1106_v39 = vadd.f32 %v1926_v36, %v1629_v7 }
 0x342   : > { %v1100_v40 = vpop.f32.mrf.mxu1 }
 0x343   : > { %v1101_v41 = vadd.f32 %v1629_v7, %v1100_v40  ;;  %1953 = vmatprep.mubr.msk.f32.mxu0 %vm269_vm1, %v1137_v37  ;;  %v1140_v44 = vmax.f32 %v1106_v39, 0.0 }
 0x344   : > { %v1929_v42 = vpop.f32.mrf.mxu1  ;;  %1954 = vmatmul.mubr.msk.f32.gmra.mxu0 %vm269_vm1, %v1138_v38 }
 0x345   : > { %v1139_v43 = vmax.f32 %v1101_v41, 0.0  ;;  %v1116_v45 = vadd.f32 %v1929_v42, %v1629_v7 }
 0x346   : > { %v1110_v46 = vpop.f32.mrf.mxu1 }
 0x347   : > { %v1111_v47 = vadd.f32 %v1629_v7, %v1110_v46  ;;  %1956 = vmatprep.mubr.msk.f32.mxu0 %vm269_vm1, %v1139_v43  ;;  %v1142_v50 = vmax.f32 %v1116_v45, 0.0  ;;  %v1372_v45 = vpop.permute.xlu0 %1371 }
 0x348   : > { %v1932_v48 = vpop.f32.mrf.mxu1  ;;  %1957 = vmatmul.mubr.msk.f32.gmra.mxu0 %vm269_vm1, %v1140_v44  ;;  %v1367_v44 = vld [vmem:[%s2320_s3] sm:$0xff] }
 0x349   : > { %v1141_v49 = vmax.f32 %v1111_v47, 0.0  ;;  %v1126_v51 = vadd.f32 %v1932_v48, %v1629_v7 }
 0x34a   : > { %v1120_v52 = vpop.f32.mrf.mxu1 }
 0x34b   : > { %v1121_v53 = vadd.f32 %v1629_v7, %v1120_v52  ;;  %1959 = vmatprep.mubr.msk.f32.mxu0 %vm269_vm1, %v1141_v49  ;;  %v1144_v55 = vmax.f32 %v1126_v51, 0.0 }
 0x34c   : > { %1960 = vmatmul.mubr.msk.f32.gmra.mxu0 %vm269_vm1, %v1142_v50 }
 0x34d   : > { %v1143_v54 = vmax.f32 %v1121_v53, 0.0 }
 0x34f   : > { %1962 = vmatprep.mubr.msk.f32.mxu0 %vm269_vm1, %v1143_v54 }
 0x350   : > { %1963 = vmatmul.mubr.msk.f32.gmra.mxu0 %vm269_vm1, %v1144_v55 }
 0x3f4   : > { %v2262_v59 = vpop.f32.mrf.mxu0 }
 0x3f5   : > { %v1278_v39 = vadd.f32 %v2262_v59, %v1651_v9 }
 0x3f6   : > { %v2264_v60 = vpop.f32.mrf.mxu0 }
 0x3f7   : > { %v1352_v41 = vmax.f32 %v1278_v39, 0.0  ;;  %v1273_v42 = vadd.f32 %v1651_v9, %v2264_v60 }
 0x3f8   : > { %v1946_v61 = vpop.f32.mrf.mxu0 }
 0x3f9   : > { %v1288_v35 = vadd.f32 %v1946_v61, %v1651_v9  ;;  %v1351_v43 = vmax.f32 %v1273_v42, 0.0 }
 0x3fa   : > { %v2266_v62 = vpop.f32.mrf.mxu0 }
 0x3fb   : > { %v1354_v37 = vmax.f32 %v1288_v35, 0.0  ;;  %v1283_v38 = vadd.f32 %v1651_v9, %v2266_v62 }
 0x3fc   : > { %v1949_v63 = vpop.f32.mrf.mxu0 }
 0x3fd   : > { %v1298_v31 = vadd.f32 %v1949_v63, %v1651_v9  ;;  %v1353_v40 = vmax.f32 %v1283_v38, 0.0 }
 0x3fe   : > { %v1292_v0 = vpop.f32.mrf.mxu0 }
 0x3ff   : > { %v1356_v33 = vmax.f32 %v1298_v31, 0.0  ;;  %v1293_v34 = vadd.f32 %v1651_v9, %v1292_v0 }
 0x400   : > { %v1952_v1 = vpop.f32.mrf.mxu0 }
 0x401   : > { %v1308_v27 = vadd.f32 %v1952_v1, %v1651_v9  ;;  %v1355_v36 = vmax.f32 %v1293_v34, 0.0 }
 0x402   : > { %v1302_v2 = vpop.f32.mrf.mxu0 }
 0x403   : > { %v1358_v29 = vmax.f32 %v1308_v27, 0.0  ;;  %v1303_v30 = vadd.f32 %v1651_v9, %v1302_v2 }
 0x404   : > { %v1955_v3 = vpop.f32.mrf.mxu0 }
 0x405   : > { %v1318_v23 = vadd.f32 %v1955_v3, %v1651_v9  ;;  %v1357_v32 = vmax.f32 %v1303_v30, 0.0 }
 0x406   : > { %v1312_v4 = vpop.f32.mrf.mxu0 }
 0x407   : > { %v1360_v25 = vmax.f32 %v1318_v23, 0.0  ;;  %v1313_v26 = vadd.f32 %v1651_v9, %v1312_v4 }
 0x408   : > { %v1958_v5 = vpop.f32.mrf.mxu0 }
 0x409   : > { %v1328_v19 = vadd.f32 %v1958_v5, %v1651_v9  ;;  %v1359_v28 = vmax.f32 %v1313_v26, 0.0 }
 0x40a   : > { %v1322_v6 = vpop.f32.mrf.mxu0 }
 0x40b   : > { %v1362_v21 = vmax.f32 %v1328_v19, 0.0  ;;  %v1323_v22 = vadd.f32 %v1651_v9, %v1322_v6 }
 0x40c   : > { %v1961_v7 = vpop.f32.mrf.mxu0 }
 0x40d   : > { %v1338_v15 = vadd.f32 %v1961_v7, %v1651_v9  ;;  %v1361_v24 = vmax.f32 %v1323_v22, 0.0 }
 0x40e   : > { %v1332_v8 = vpop.f32.mrf.mxu0 }
 0x40f   : > { %v1364_v17 = vmax.f32 %v1338_v15, 0.0  ;;  %v1333_v18 = vadd.f32 %v1651_v9, %v1332_v8 }
 0x410   : > { %v1964_v10 = vpop.f32.mrf.mxu0 }
 0x411   : > { %v1348_v11 = vadd.f32 %v1964_v10, %v1651_v9  ;;  %v1363_v20 = vmax.f32 %v1333_v18, 0.0 }
 0x412   : > { %v1342_v12 = vpop.f32.mrf.mxu0 }
 0x413   : > { %v1366_v13 = vmax.f32 %v1348_v11, 0.0  ;;  %v1343_v14 = vadd.f32 %v1651_v9, %v1342_v12 }
 0x415   : > { %1966 = vmatpush3.xpose.msk.msra.mxu1 %vm269_vm1, %v1366_v13  ;;  %v1365_v16 = vmax.f32 %v1343_v14, 0.0 }
 0x416   : > { %1967 = vmatprep.subr.mxu1 %v2024_v56 }
 0x419   : > { %1968 = vmatpush3.xpose.msk.msra.mxu1 %vm269_vm1, %v1365_v16 }
 0x41a   : > { %1969 = vmatprep.subr.mxu1 %v2024_v56 }
 0x41d   : > { %1970 = vmatpush3.xpose.msk.msra.mxu1 %vm269_vm1, %v1364_v17 }
 0x41e   : > { %1971 = vmatprep.subr.mxu1 %v2024_v56 }
 0x421   : > { %1972 = vmatpush3.xpose.msk.msra.mxu1 %vm269_vm1, %v1363_v20 }
 0x422   : > { %1973 = vmatprep.subr.mxu1 %v2024_v56 }
 0x425   : > { %1974 = vmatpush3.xpose.msk.msra.mxu1 %vm269_vm1, %v1362_v21 }
 0x426   : > { %1975 = vmatprep.subr.mxu1 %v2024_v56 }
 0x429   : > { %1976 = vmatpush3.xpose.msk.msra.mxu1 %vm269_vm1, %v1361_v24 }
 0x42a   : > { %1977 = vmatprep.subr.mxu1 %v2024_v56 }
 0x42d   : > { %1978 = vmatpush3.xpose.msk.msra.mxu1 %vm269_vm1, %v1360_v25 }
 0x42e   : > { %1979 = vmatprep.subr.mxu1 %v2024_v56 }
 0x431   : > { %1980 = vmatpush3.xpose.msk.msra.mxu1 %vm269_vm1, %v1359_v28 }
 0x432   : > { %1981 = vmatprep.subr.mxu1 %v2024_v56 }
 0x435   : > { %1982 = vmatpush3.xpose.msk.msra.mxu1 %vm269_vm1, %v1358_v29 }
 0x436   : > { %1983 = vmatprep.subr.mxu1 %v2024_v56 }
 0x439   : > { %1984 = vmatpush3.xpose.msk.msra.mxu1 %vm269_vm1, %v1357_v32 }
 0x43a   : > { %1985 = vmatprep.subr.mxu1 %v2024_v56 }
 0x43d   : > { %1986 = vmatpush3.xpose.msk.msra.mxu1 %vm269_vm1, %v1356_v33 }
 0x43e   : > { %1987 = vmatprep.subr.mxu1 %v2024_v56 }
 0x441   : > { %1988 = vmatpush3.xpose.msk.msra.mxu1 %vm269_vm1, %v1355_v36 }
 0x442   : > { %1989 = vmatprep.subr.mxu1 %v2024_v56 }
 0x445   : > { %1990 = vmatpush3.xpose.msk.msra.mxu1 %vm269_vm1, %v1354_v37 }
 0x446   : > { %1991 = vmatprep.subr.mxu1 %v2024_v56 }
 0x449   : > { %1992 = vmatpush3.xpose.msk.msra.mxu1 %vm269_vm1, %v1353_v40 }
 0x44a   : > { %1993 = vmatprep.subr.mxu1 %v2024_v56 }
 0x44d   : > { %1994 = vmatpush3.xpose.msk.msra.mxu1 %vm269_vm1, %v1352_v41 }
 0x44e   : > { %1995 = vmatprep.subr.mxu1 %v2024_v56 }
 0x451   : > { %1996 = vmatpush3.xpose.msk.msra.mxu1 %vm269_vm1, %v1351_v43 }
 0x454   : > { %1998 = vmatmul.mubr.msk.f32.vlgmr.msra.gmra.mxu1 %vm269_vm1, %v1367_v44 }
 0x514   : > { %v1491_v46 = vpop.f32.mrf.mxu1 }
 0x515   : > { %v1492_v47 = vadd.f32 %v1491_v46, %v1372_v45 }
 0x516   : > { %v1999_v48 = vpop.f32.mrf.mxu1 }
 0x517   : > { %v1685_v49 = vmul.f32 -1.442695, %v1492_v47 }
 0x519   : > { %2012 = vpow2.f32 %v1685_v49 }
 0x526   : > { %v2013_v50 = vpop.eup %2012 }
 0x527   : > { %v1498_v51 = vadd.f32 1.0, %v2013_v50 }
 0x529   : > { %2014 = vrcp.f32 %v1498_v51 }
 0x536   : > { %v2015_v52 = vpop.eup %2014 }
 0x537   : > { %1501 = vst [vmem:[%s224_s11] sm:$0xff] %v2015_v52 }
 0x538 PF: > { %s15_s18 = sadd.s32 1, %s2022_s18  }
 0x539   : > { %p12_p5 = scmp.ge.s32.totalorder %s15_s18, 4  }
 0x53b   :  { %14 = sbr.rel (!%p12_p5) target bundleno = 1 (0x1), region = 78 }

</bundles_post_ra>
